<compile_context>
chip_gen: v5e
topology: v5e:2x2
jax: 0.10.0
libtpu: 0.0.40
codegen_flags: <defaults>
</compile_context>

<pallas_src>
import functools

import jax
import jax.numpy as jnp
import numpy as np
from jax.experimental import pallas as pl
from jax.experimental.pallas import tpu as pltpu

BN_EPS = 1e-5  # nn.BatchNorm1d default eps


# ---------------------------------------------------------------------------
# fused BatchNorm helpers (shared by kernel and the kernel-emulating reference)
# ---------------------------------------------------------------------------
def _bn_stats(a):
    """Per-feature batch mean / biased variance via var = E[x^2] - mu^2.

    The two reductions are independent (no serialized second pass over
    (a - mu)), and the per-element work is a single fused mul/add epilogue.
    """
    inv_b = 1.0 / a.shape[0]
    mu = jnp.sum(a, axis=0, keepdims=True) * inv_b
    ex2 = jnp.sum(a * a, axis=0, keepdims=True) * inv_b
    var = jnp.maximum(ex2 - mu * mu, 0.0)
    return mu, var


def _bn_affine_relu(a, gamma, beta):
    mu, var = _bn_stats(a)
    scale = gamma * jax.lax.rsqrt(var + BN_EPS)   # (1, H) — gamma folded in
    shift = beta - mu * scale                     # (1, H)
    return jnp.maximum(a * scale + shift, 0.0)    # fused BN + ReLU


def _bn_plain(a):
    mu, var = _bn_stats(a)
    return (a - mu) * jax.lax.rsqrt(var + BN_EPS)


# ---------------------------------------------------------------------------
# Pallas kernel
# ---------------------------------------------------------------------------
def simsiam_projector_kernel(x_ref, w_ref, bn_ref, out_ref, *,
                             dim, hidden, compute_dtype):
    x = x_ref[...]                                    # (B, dim), compute dtype

    # Static slices of the packed weight slab (free views, no index math).
    w1 = w_ref[0:dim, :]                              # (dim, H)
    w2 = w_ref[dim:dim + hidden, :]                   # (H, H)
    w3 = w_ref[dim + hidden:dim + 2 * hidden, :]      # (H, H); cols >= proj == 0

    g1 = bn_ref[0:1, :]
    b1 = bn_ref[1:2, :]
    g2 = bn_ref[2:3, :]
    b2 = bn_ref[3:4, :]

    # Linear -> BN(affine) -> ReLU, twice.  bf16 operands, f32 accumulation.
    a = jnp.dot(x, w1, preferred_element_type=jnp.float32)            # (B, H)
    a = _bn_affine_relu(a, g1, b1)
    a = jnp.dot(a.astype(compute_dtype), w2,
                preferred_element_type=jnp.float32)                   # (B, H)
    a = _bn_affine_relu(a, g2, b2)
    a = jnp.dot(a.astype(compute_dtype), w3,
                preferred_element_type=jnp.float32)                   # (B, H)

    # Final BatchNorm1d(proj, affine=False).  Padded lanes (cols >= proj) are
    # identically zero (mu = var = 0 -> output 0), so full-width BN is exact on
    # the first `proj` lanes.  Store the full lane-dense (B, H) slab; the
    # wrapper drops the zero padding.
    out_ref[...] = _bn_plain(a)


def simsiam_projector(x, w_slab, bn_slab, *, dim, hidden, proj,
                      compute_dtype=jnp.bfloat16):
    """x: (G, B, dim).  G = independent BN groups (e.g. the two SimSiam views);
    each group gets its own batch statistics, matching one PyTorch forward
    call per view."""
    g_views, batch, _ = x.shape
    xc = x.astype(compute_dtype)

    flops = 2 * g_views * batch * (dim * hidden + 2 * hidden * hidden)
    bytes_accessed = (xc.size * xc.dtype.itemsize
                      + w_slab.size * w_slab.dtype.itemsize
                      + bn_slab.size * bn_slab.dtype.itemsize
                      + g_views * batch * hidden * 4)
    cost = pl.CostEstimate(flops=flops,
                           transcendentals=3 * hidden * g_views,
                           bytes_accessed=bytes_accessed)

    kernel = functools.partial(simsiam_projector_kernel, dim=dim, hidden=hidden,
                               compute_dtype=compute_dtype)
    out = pl.pallas_call(
        kernel,
        out_shape=jax.ShapeDtypeStruct((g_views, batch, hidden), jnp.float32),
        grid=(g_views,),
        in_specs=[
            # per-group activation block (leading group dim squeezed away)
            pl.BlockSpec((None, batch, dim), lambda g: (g, 0, 0)),
            # weight / BN slabs: same block for every grid step -> single DMA
            pl.BlockSpec((dim + 2 * hidden, hidden), lambda g: (0, 0)),
            pl.BlockSpec((4, hidden), lambda g: (0, 0)),
        ],
        out_specs=pl.BlockSpec((None, batch, hidden), lambda g: (g, 0, 0)),
        compiler_params=pltpu.CompilerParams(
            dimension_semantics=("parallel",)),
        cost_estimate=cost,
    )(xc, w_slab, bn_slab)

    # Kernel stores a 128-lane-dense slab (unmasked vst); drop the padding here.
    return out[:, :, :proj]


# ---------------------------------------------------------------------------
# deterministic parameter construction + host-side packing
# ---------------------------------------------------------------------------
def make_params(key, dim, hidden, proj):
    k1, k2, k3, k4, k5, k6, k7 = jax.random.split(key, 7)

    def lin(k, fan_in, fan_out):
        bound = 1.0 / np.sqrt(fan_in)
        return jax.random.uniform(k, (fan_in, fan_out), jnp.float32, -bound, bound)

    w1 = lin(k1, dim, hidden)        # Linear(dim -> hidden, bias=False)
    w2 = lin(k2, hidden, hidden)     # Linear(hidden -> hidden, bias=False)
    w3 = lin(k3, hidden, proj)       # Linear(hidden -> proj, bias=False)
    # BatchNorm affine params (randomized so the affine path is exercised).
    g1 = 1.0 + 0.1 * jax.random.normal(k4, (hidden,), jnp.float32)
    b1 = 0.1 * jax.random.normal(k5, (hidden,), jnp.float32)
    g2 = 1.0 + 0.1 * jax.random.normal(k6, (hidden,), jnp.float32)
    b2 = 0.1 * jax.random.normal(k7, (hidden,), jnp.float32)
    return w1, g1, b1, w2, g2, b2, w3


def pack_params(params, dim, hidden, proj, weight_dtype=jnp.bfloat16):
    """Pack all parameters into two lane-dense slabs (2 DMAs instead of 7)."""
    assert proj <= hidden, "w3 is zero-padded to `hidden` output lanes"
    w1, g1, b1, w2, g2, b2, w3 = params
    w3_pad = jnp.zeros((hidden, hidden), jnp.float32).at[:, :proj].set(w3)
    w_slab = jnp.concatenate([w1, w2, w3_pad], axis=0).astype(weight_dtype)
    bn_slab = jnp.stack([g1, b1, g2, b2], axis=0).astype(jnp.float32)
    # The final full-width BN relies on the padded columns being exactly zero.
    np.testing.assert_array_equal(
        np.asarray(w_slab[dim + hidden:, proj:], dtype=np.float32), 0.0)
    return w_slab, bn_slab


# ---------------------------------------------------------------------------
# references for validation
# ---------------------------------------------------------------------------
def reference_f32(x, params):
    """Mirrors the PyTorch forward at full f32 / HIGHEST precision (one group)."""
    w1, g1, b1, w2, g2, b2, w3 = params
    hp = jax.lax.Precision.HIGHEST

    def bn(a, gamma=None, beta=None):
        mu = jnp.mean(a, axis=0, keepdims=True)
        var = jnp.mean((a - mu) ** 2, axis=0, keepdims=True)
        y = (a - mu) / jnp.sqrt(var + BN_EPS)
        if gamma is not None:
            y = y * gamma + beta
        return y

    a = jnp.maximum(bn(jnp.dot(x, w1, precision=hp), g1, b1), 0.0)
    a = jnp.maximum(bn(jnp.dot(a, w2, precision=hp), g2, b2), 0.0)
    return bn(jnp.dot(a, w3, precision=hp))


def reference_compute(x, params, compute_dtype):
    """Emulates the kernel's numerics (bf16 matmul inputs, f32 accum, fused BN)."""
    w1, g1, b1, w2, g2, b2, w3 = params
    c = compute_dtype

    def dot(a, w):
        return jnp.dot(a.astype(c), w.astype(c), preferred_element_type=jnp.float32)

    a = _bn_affine_relu(dot(x, w1), g1[None, :], b1[None, :])
    a = _bn_affine_relu(dot(a, w2), g2[None, :], b2[None, :])
    return _bn_plain(dot(a, w3))


if __name__ == "__main__":
    # G groups (the two SimSiam views), B=128 per group fills the MXU M dim.
    G, B, DIM, HIDDEN, PROJ = 2, 128, 32, 128, 64

    key = jax.random.PRNGKey(0)
    kx, kp = jax.random.split(key)
    x = jax.random.normal(kx, (G, B, DIM), jnp.float32)

    params = make_params(kp, DIM, HIDDEN, PROJ)
    w_slab, bn_slab = pack_params(params, DIM, HIDDEN, PROJ,
                                  weight_dtype=jnp.bfloat16)

    out = simsiam_projector(x, w_slab, bn_slab, dim=DIM, hidden=HIDDEN,
                            proj=PROJ, compute_dtype=jnp.bfloat16)
    out = jax.block_until_ready(out)
    assert out.shape == (G, B, PROJ)

    # (a) tight check vs a reference emulating the kernel's bf16/f32 numerics
    ref_c = jnp.stack([reference_compute(x[g], params, jnp.bfloat16)
                       for g in range(G)])
    np.testing.assert_allclose(np.asarray(out), np.asarray(jax.block_until_ready(ref_c)),
                               rtol=1e-2, atol=1e-2)

    # (b) loose check vs the full-f32 PyTorch-mirror reference (bf16 operands)
    ref_f = jnp.stack([reference_f32(x[g], params) for g in range(G)])
    np.testing.assert_allclose(np.asarray(out), np.asarray(jax.block_until_ready(ref_f)),
                               rtol=5e-2, atol=5e-2)

    print("KERNEL_OK")
</pallas_src>

<mosaic_0001>
module attributes {stable_mosaic.version = 11 : i64} {
  func.func @simsiam_projector_kernel(%arg0: i32, %arg1: memref<1x128x32xbf16, #tpu.memory_space<vmem>>, %arg2: memref<288x128xbf16, #tpu.memory_space<vmem>>, %arg3: memref<4x128xf32, #tpu.memory_space<vmem>>, %arg4: memref<1x128x128xf32, #tpu.memory_space<vmem>>) attributes {dimension_semantics = [#tpu.dimension_semantics<parallel>], iteration_bounds = array<i64: 2>, scalar_prefetch = 0 : i64, scratch_operands = 0 : i64, tpu.core_type = #tpu.core_type<tc>, window_params = [{transform_indices = @transform_0, window_bounds = array<i64: 1, 128, 32>}, {pipeline_mode = #tpu.pipeline_mode<synchronous>, transform_indices = @transform_1, window_bounds = array<i64: 288, 128>}, {pipeline_mode = #tpu.pipeline_mode<synchronous>, transform_indices = @transform_2, window_bounds = array<i64: 4, 128>}, {transform_indices = @transform_3, window_bounds = array<i64: 1, 128, 128>}]} {
    %c0 = arith.constant 0 : index
    %c0_0 = arith.constant 0 : index
    %c0_1 = arith.constant 0 : index
    %0 = vector.load %arg1[%c0, %c0_0, %c0_1] : memref<1x128x32xbf16, #tpu.memory_space<vmem>>, vector<1x128x32xbf16>
    %1 = vector.shape_cast %0 : vector<1x128x32xbf16> to vector<128x32xbf16>
    %c0_2 = arith.constant 0 : index
    %c0_3 = arith.constant 0 : index
    %2 = vector.load %arg2[%c0_2, %c0_3] : memref<288x128xbf16, #tpu.memory_space<vmem>>, vector<32x128xbf16>
    %c32 = arith.constant 32 : index
    %c0_4 = arith.constant 0 : index
    %3 = vector.load %arg2[%c32, %c0_4] : memref<288x128xbf16, #tpu.memory_space<vmem>>, vector<128x128xbf16>
    %c160 = arith.constant 160 : index
    %c0_5 = arith.constant 0 : index
    %4 = vector.load %arg2[%c160, %c0_5] : memref<288x128xbf16, #tpu.memory_space<vmem>>, vector<128x128xbf16>
    %c0_6 = arith.constant 0 : index
    %c0_7 = arith.constant 0 : index
    %5 = vector.load %arg3[%c0_6, %c0_7] : memref<4x128xf32, #tpu.memory_space<vmem>>, vector<1x128xf32>
    %c1 = arith.constant 1 : index
    %c0_8 = arith.constant 0 : index
    %6 = vector.load %arg3[%c1, %c0_8] : memref<4x128xf32, #tpu.memory_space<vmem>>, vector<1x128xf32>
    %c2 = arith.constant 2 : index
    %c0_9 = arith.constant 0 : index
    %7 = vector.load %arg3[%c2, %c0_9] : memref<4x128xf32, #tpu.memory_space<vmem>>, vector<1x128xf32>
    %c3 = arith.constant 3 : index
    %c0_10 = arith.constant 0 : index
    %8 = vector.load %arg3[%c3, %c0_10] : memref<4x128xf32, #tpu.memory_space<vmem>>, vector<1x128xf32>
    %cst = arith.constant dense<0.000000e+00> : vector<128x128xf32>
    %9 = tpu.matmul %1, %2, %cst {dimension_numbers = #tpu.dot_dimension_numbers<[1], [0], [0], [1], [0, 0, 1, 1], [], []>} : vector<128x32xbf16>, vector<32x128xbf16>, vector<128x128xf32> -> vector<128x128xf32>
    %cst_11 = arith.constant dense<0.000000e+00> : vector<128xf32>
    %10 = vector.multi_reduction <add>, %9, %cst_11 [0] : vector<128x128xf32> to vector<128xf32>
    %11 = vector.shape_cast %10 : vector<128xf32> to vector<1x128xf32>
    %cst_12 = arith.constant 7.812500e-03 : f32
    %12 = vector.broadcast %cst_12 : f32 to vector<1x128xf32>
    %13 = arith.mulf %11, %12 : vector<1x128xf32>
    %14 = arith.mulf %9, %9 : vector<128x128xf32>
    %cst_13 = arith.constant dense<0.000000e+00> : vector<128xf32>
    %15 = vector.multi_reduction <add>, %14, %cst_13 [0] : vector<128x128xf32> to vector<128xf32>
    %16 = vector.shape_cast %15 : vector<128xf32> to vector<1x128xf32>
    %cst_14 = arith.constant 7.812500e-03 : f32
    %17 = vector.broadcast %cst_14 : f32 to vector<1x128xf32>
    %18 = arith.mulf %16, %17 : vector<1x128xf32>
    %19 = arith.mulf %13, %13 : vector<1x128xf32>
    %20 = arith.subf %18, %19 : vector<1x128xf32>
    %cst_15 = arith.constant 0.000000e+00 : f32
    %21 = vector.broadcast %cst_15 : f32 to vector<1x128xf32>
    %22 = arith.maximumf %20, %21 : vector<1x128xf32>
    %cst_16 = arith.constant 9.99999974E-6 : f32
    %23 = vector.broadcast %cst_16 : f32 to vector<1x128xf32>
    %24 = arith.addf %22, %23 : vector<1x128xf32>
    %25 = math.rsqrt %24 : vector<1x128xf32>
    %26 = arith.mulf %5, %25 : vector<1x128xf32>
    %27 = arith.mulf %13, %26 : vector<1x128xf32>
    %28 = arith.subf %6, %27 : vector<1x128xf32>
    %29 = vector.broadcast %26 : vector<1x128xf32> to vector<128x128xf32>
    %30 = arith.mulf %9, %29 : vector<128x128xf32>
    %31 = vector.broadcast %28 : vector<1x128xf32> to vector<128x128xf32>
    %32 = arith.addf %30, %31 : vector<128x128xf32>
    %cst_17 = arith.constant 0.000000e+00 : f32
    %33 = vector.broadcast %cst_17 : f32 to vector<128x128xf32>
    %34 = arith.maximumf %32, %33 : vector<128x128xf32>
    %35 = arith.truncf %34 : vector<128x128xf32> to vector<128x128xbf16>
    %cst_18 = arith.constant dense<0.000000e+00> : vector<128x128xf32>
    %36 = tpu.matmul %35, %3, %cst_18 {dimension_numbers = #tpu.dot_dimension_numbers<[1], [0], [0], [1], [0, 0, 1, 1], [], []>} : vector<128x128xbf16>, vector<128x128xbf16>, vector<128x128xf32> -> vector<128x128xf32>
    %cst_19 = arith.constant dense<0.000000e+00> : vector<128xf32>
    %37 = vector.multi_reduction <add>, %36, %cst_19 [0] : vector<128x128xf32> to vector<128xf32>
    %38 = vector.shape_cast %37 : vector<128xf32> to vector<1x128xf32>
    %cst_20 = arith.constant 7.812500e-03 : f32
    %39 = vector.broadcast %cst_20 : f32 to vector<1x128xf32>
    %40 = arith.mulf %38, %39 : vector<1x128xf32>
    %41 = arith.mulf %36, %36 : vector<128x128xf32>
    %cst_21 = arith.constant dense<0.000000e+00> : vector<128xf32>
    %42 = vector.multi_reduction <add>, %41, %cst_21 [0] : vector<128x128xf32> to vector<128xf32>
    %43 = vector.shape_cast %42 : vector<128xf32> to vector<1x128xf32>
    %cst_22 = arith.constant 7.812500e-03 : f32
    %44 = vector.broadcast %cst_22 : f32 to vector<1x128xf32>
    %45 = arith.mulf %43, %44 : vector<1x128xf32>
    %46 = arith.mulf %40, %40 : vector<1x128xf32>
    %47 = arith.subf %45, %46 : vector<1x128xf32>
    %cst_23 = arith.constant 0.000000e+00 : f32
    %48 = vector.broadcast %cst_23 : f32 to vector<1x128xf32>
    %49 = arith.maximumf %47, %48 : vector<1x128xf32>
    %cst_24 = arith.constant 9.99999974E-6 : f32
    %50 = vector.broadcast %cst_24 : f32 to vector<1x128xf32>
    %51 = arith.addf %49, %50 : vector<1x128xf32>
    %52 = math.rsqrt %51 : vector<1x128xf32>
    %53 = arith.mulf %7, %52 : vector<1x128xf32>
    %54 = arith.mulf %40, %53 : vector<1x128xf32>
    %55 = arith.subf %8, %54 : vector<1x128xf32>
    %56 = vector.broadcast %53 : vector<1x128xf32> to vector<128x128xf32>
    %57 = arith.mulf %36, %56 : vector<128x128xf32>
    %58 = vector.broadcast %55 : vector<1x128xf32> to vector<128x128xf32>
    %59 = arith.addf %57, %58 : vector<128x128xf32>
    %cst_25 = arith.constant 0.000000e+00 : f32
    %60 = vector.broadcast %cst_25 : f32 to vector<128x128xf32>
    %61 = arith.maximumf %59, %60 : vector<128x128xf32>
    %62 = arith.truncf %61 : vector<128x128xf32> to vector<128x128xbf16>
    %cst_26 = arith.constant dense<0.000000e+00> : vector<128x128xf32>
    %63 = tpu.matmul %62, %4, %cst_26 {dimension_numbers = #tpu.dot_dimension_numbers<[1], [0], [0], [1], [0, 0, 1, 1], [], []>} : vector<128x128xbf16>, vector<128x128xbf16>, vector<128x128xf32> -> vector<128x128xf32>
    %cst_27 = arith.constant dense<0.000000e+00> : vector<128xf32>
    %64 = vector.multi_reduction <add>, %63, %cst_27 [0] : vector<128x128xf32> to vector<128xf32>
    %65 = vector.shape_cast %64 : vector<128xf32> to vector<1x128xf32>
    %cst_28 = arith.constant 7.812500e-03 : f32
    %66 = vector.broadcast %cst_28 : f32 to vector<1x128xf32>
    %67 = arith.mulf %65, %66 : vector<1x128xf32>
    %68 = arith.mulf %63, %63 : vector<128x128xf32>
    %cst_29 = arith.constant dense<0.000000e+00> : vector<128xf32>
    %69 = vector.multi_reduction <add>, %68, %cst_29 [0] : vector<128x128xf32> to vector<128xf32>
    %70 = vector.shape_cast %69 : vector<128xf32> to vector<1x128xf32>
    %cst_30 = arith.constant 7.812500e-03 : f32
    %71 = vector.broadcast %cst_30 : f32 to vector<1x128xf32>
    %72 = arith.mulf %70, %71 : vector<1x128xf32>
    %73 = arith.mulf %67, %67 : vector<1x128xf32>
    %74 = arith.subf %72, %73 : vector<1x128xf32>
    %cst_31 = arith.constant 0.000000e+00 : f32
    %75 = vector.broadcast %cst_31 : f32 to vector<1x128xf32>
    %76 = arith.maximumf %74, %75 : vector<1x128xf32>
    %77 = vector.broadcast %67 : vector<1x128xf32> to vector<128x128xf32>
    %78 = arith.subf %63, %77 : vector<128x128xf32>
    %cst_32 = arith.constant 9.99999974E-6 : f32
    %79 = vector.broadcast %cst_32 : f32 to vector<1x128xf32>
    %80 = arith.addf %76, %79 : vector<1x128xf32>
    %81 = math.rsqrt %80 : vector<1x128xf32>
    %82 = vector.broadcast %81 : vector<1x128xf32> to vector<128x128xf32>
    %83 = arith.mulf %78, %82 : vector<128x128xf32>
    %c0_33 = arith.constant 0 : index
    %c0_34 = arith.constant 0 : index
    %c0_35 = arith.constant 0 : index
    %84 = vector.load %arg4[%c0_33, %c0_34, %c0_35] : memref<1x128x128xf32, #tpu.memory_space<vmem>>, vector<1x128x128xf32>
    %85 = vector.shape_cast %84 : vector<1x128x128xf32> to vector<128x128xf32>
    %86 = vector.shape_cast %83 : vector<128x128xf32> to vector<1x128x128xf32>
    tpu.vector_store %arg4[%c0_33, %c0_34, %c0_35], %86 {strides = array<i32>} : memref<1x128x128xf32, #tpu.memory_space<vmem>>, vector<1x128x128xf32>,
    return
  }
  func.func @transform_0(%arg0: i32) -> (i32, i32, i32) {
    %c0_i32 = arith.constant 0 : i32
    %c0_i32_0 = arith.constant 0 : i32
    %c0_i32_1 = arith.constant 0 : i32
    return %arg0, %c0_i32, %c0_i32_0 : i32, i32, i32
  }
  func.func @transform_1(%arg0: i32) -> (i32, i32) {
    %c0_i32 = arith.constant 0 : i32
    %c0_i32_0 = arith.constant 0 : i32
    %c0_i32_1 = arith.constant 0 : i32
    return %c0_i32, %c0_i32_0 : i32, i32
  }
  func.func @transform_2(%arg0: i32) -> (i32, i32) {
    %c0_i32 = arith.constant 0 : i32
    %c0_i32_0 = arith.constant 0 : i32
    %c0_i32_1 = arith.constant 0 : i32
    return %c0_i32, %c0_i32_0 : i32, i32
  }
  func.func @transform_3(%arg0: i32) -> (i32, i32, i32) {
    %c0_i32 = arith.constant 0 : i32
    %c0_i32_0 = arith.constant 0 : i32
    %c0_i32_1 = arith.constant 0 : i32
    return %arg0, %c0_i32, %c0_i32_0 : i32, i32, i32
  }
}

</mosaic_0001>

<bundles_post_ra>
// kernel: tpu_custom_call.1
= control target key start
LH: loop header
LB: loop body
LE: loop exit
PB: predicated region body
PF: predicated region fallthrough
CT: control target
= control target key end

     0   :  { %8 = vsyncpa [#allocation3], 0  ;;  %s1793_s0 = inlined_call_operand.vmem [shape: bf16[2,128,32], index: 0, kind: input, shape index: {}]   ;;  %s1794_s1 = inlined_call_operand.vmem [shape: bf16[288,128], index: 1, kind: input, shape index: {}]   ;;  %s1795_s2 = inlined_call_operand.vmem [shape: f32[4,128], index: 2, kind: input, shape index: {}]   ;;  %s1796_s3 = inlined_call_operand.hbm [shape: f32[2,128,128], index: 3, kind: output, shape index: {}]  }
   0x1   :  { %10 = vsyncpa [#allocation3 + $0x1], 0  ;;  %s1317_s12 = smov 0   ;;  %s1319_s13 = smov 0  }
   0x2   :  { %s1321_s14 = smov 0   ;;  %s1323_s15 = smov 0  }
   0x3 LB: > { %s1338_s16 = sadd.s32 4294967295, %s1293_s15   ;;  %s1016_s17 = sadd.s32 4294967294, %s1293_s15   ;;  %s1293_s15 = sphi %s1323_s15, %s1802_s15   ;;  %s1289_s14 = sphi %s1321_s14, %s1801_s14   ;;  %s1285_s13 = sphi %s1319_s13, %s1800_s13   ;;  %s1281_s12 = sphi %s1317_s12, %s1799_s12  }
   0x4   : > { %s1342_s18 = sadd.s32 1, %s1293_s15   ;;  %s91_s19 = sadd.s32 1, %s1289_s14 }
   0x5   : > { %s88_s20 = ssub.s32 %s1293_s15, %s1342_s18  ;;  %p101_p0 = scmp.ne.s32.totalorder %s1289_s14, %s1285_s13 }
   0x6   : > { %p89_p1 = scmp.eq.s32.totalorder %s88_s20, 0  ;;  %p102_p2 = scmp.eq.s32.totalorder %s1338_s16, 1 }
   0x7   : > { %p107_p3 = scmp.ne.s32.totalorder %s1285_s13, %s1281_s12  ;;  %p108_p4 = scmp.eq.s32.totalorder %s1016_s17, 1 }
   0x8   : > { %s1353_s21 = scalar_select %p89_p1, %s1289_s14, %s91_s19  }
   0x9   : > { %p1355_p5 = por %p102_p2, %p101_p0  ;;  %p1359_p6 = por %p108_p4, %p107_p3 }
   0xa   : > { %p1019_p7 = scmp.ge.s32.totalorder %s1293_s15, 1  ;;  %p140_p8 = scmp.lt.s32.totalorder %s1293_s15, 3 }
   0xc   : > { %p141_p9 = pnand %p1019_p7, %p140_p8 }
   0xd   : > { %p164_p10 = scmp.lt.s32.totalorder (!%p141_p9), %s1338_s16, 1  ;;  %s161_s10 = sand.u32 (!%p141_p9), 1, %s1285_s13  }
   0xe   : > { %144 = sbr.rel (%p141_p9) target bundleno = 898 (0x382), region = 32  ;;  %s1020_s11 = sshll.u32 (!%p141_p9), %s161_s10, 7 }
   0xf   : > { %s1723_s17 = scalar_lea.vmem (!%p141_p9), [#allocation2], %s1020_s11  ;;  %s1167_s19 = sshll.u32 (!%p141_p9), %s1338_s16, 7 }
  0x10   : > { %s950_s24 = scalar_lea.hbm (!%p141_p9), %s1796_s3, %s1167_s19  ;;  %s951_s25 = sshll.u32 (!%p141_p9), %s1723_s17, 4  ;;  %s952_s25 = int_to_ptr.vmem [resolvable:$true] %s951_s25 }
  0x11   : > { %s953_s26 = sshll.u32 (!%p141_p9), %s950_s24, 4  ;;  %s939_s27 = scalar_lea.sflag (!%p141_p9), [#allocation3], %s161_s10  ;;  %s954_s26 = int_to_ptr.hbm [resolvable:$true] %s953_s26 }
  0x13   : > { %v1150_v0 = vld [vmem:[%s1794_s1 + $0x8] sm:$0xff]  ;;  %v1149_v1 = vld [vmem:[%s1794_s1] sm:$0xff]  ;;  %s165_s28 = scalar_select %p164_p10, %s1338_s16, 1  ;;  %vm278_vm0 = vcmask 261120  }
  0x14   : > { %309 = vmatpush.bf16.msra.mxu0 %v1150_v0  ;;  %v1158_v56 = vld [vmem:[%s1794_s1 + $0x48] sm:$0xff]  ;;  %v1157_v63 = vld [vmem:[%s1794_s1 + $0x40] sm:$0xff] }
  0x15   : > { %s1140_s29 = sshll.u32 %s165_s28, 6  ;;  %535 = vmatpush.bf16.msra.mxu1 %v1158_v56  ;;  %1168 = vmatpush.bf16.msra.mxu3 %v1158_v56  ;;  %s1245_s28 = sshra.s32 %s954_s26, 4  ;;  %s1246_s28 = int_to_ptr.hbm [resolvable:$true] %s1245_s28 }
  0x16   : > { %s168_s5 = scalar_lea.vmem %s1793_s0, %s1140_s29  ;;  %s1247_s29 = scalar_lea.hbm %s1246_s28, 128 }
  0x17   : > { %v1141_v2 = vld [vmem:[%s168_s5] sm:$0xff]  ;;  %v1142_v3 = vld [vmem:[%s168_s5 + $0x8] sm:$0xff]  ;;  %v1143_v4 = vld [vmem:[%s168_s5 + $0x10] sm:$0xff]  ;;  %p1248_p11 = scmp.ne.s32.totalorder %s1246_s28, %s1247_s29  ;;  %p1252_p0 = scmp.lt.s32.totalorder %s1246_s28, %s1796_s3 }
  0x18   : > { %310 = vmatpush.bf16.msra.mxu0 %v1149_v1  ;;  %v1144_v5 = vld [vmem:[%s168_s5 + $0x18] sm:$0xff]  ;;  %v1145_v6 = vld [vmem:[%s168_s5 + $0x20] sm:$0xff]  ;;  %v1146_v7 = vld [vmem:[%s168_s5 + $0x28] sm:$0xff] }
  0x19   : > { %v1147_v8 = vld [vmem:[%s168_s5 + $0x30] sm:$0xff]  ;;  %v1148_v9 = vld [vmem:[%s168_s5 + $0x38] sm:$0xff]  ;;  %536 = vmatpush.bf16.msra.mxu1 %v1157_v63  ;;  %1169 = vmatpush.bf16.msra.mxu3 %v1157_v63  ;;  %p1249_p12 = pnand %p1248_p11, %p1355_p5  ;;  %s1251_s5 = scalar_lea.hbm %s1796_s3, 256 }
  0x1a   : > { %p1253_p1 = scmp.lt.s32.totalorder %s1251_s5, %s1247_s29 }
  0x1b   : > { %1063 = vmatmul.msk.bf16.vlgmr.msra.gmra.mxu0 %vm278_vm0, %v1141_v2  ;;  %p1250_p13 = pneg %p1249_p12 }
  0x1c   : > { %p1254_p2 = por %p1253_p1, %p1252_p0 }
  0x1e   : > { %p1255_p3 = pnand %p1254_p2, %p1250_p13 }
  0x2b   : > { %1064 = vmatmul.msk.bf16.gmra.mxu0 %vm278_vm0, %v1142_v3 }
  0x3b   : > { %1065 = vmatmul.msk.bf16.gmra.mxu0 %vm278_vm0, %v1143_v4 }
  0x4b   : > { %1066 = vmatmul.msk.bf16.gmra.mxu0 %vm278_vm0, %v1144_v5 }
  0x5b   : > { %1067 = vmatmul.msk.bf16.gmra.mxu0 %vm278_vm0, %v1145_v6  ;;  %v1156_v6 = vld [vmem:[%s1794_s1 + $0x38] sm:$0xff] }
  0x5c   : > { %537 = vmatpush.bf16.msra.mxu1 %v1156_v6  ;;  %1170 = vmatpush.bf16.msra.mxu3 %v1156_v6 }
  0x6b   : > { %1068 = vmatmul.msk.bf16.gmra.mxu0 %vm278_vm0, %v1146_v7 }
  0x7b   : > { %1069 = vmatmul.msk.bf16.gmra.mxu0 %vm278_vm0, %v1147_v8 }
  0x8b   : > { %1070 = vmatmul.msk.bf16.gmra.mxu0 %vm278_vm0, %v1148_v9 }
  0x98   : > { %v1376_v10 = vpop.f32.mrf.mxu0 }
  0x99   : > { %v374_v23 = vmul.f32 %v1376_v10, %v1376_v10 }
  0xa0   : > { %v1378_v11 = vpop.f32.mrf.mxu0 }
  0xa1   : > { %v375_v22 = vmul.f32 %v1378_v11, %v1378_v11  ;;  %v352_v24 = vadd.f32 %v1378_v11, %v1376_v10 }
  0xa3   : > { %v390_v26 = vadd.f32 %v375_v22, %v374_v23 }
  0xa8   : > { %v1380_v12 = vpop.f32.mrf.mxu0 }
  0xa9   : > { %v376_v25 = vmul.f32 %v1380_v12, %v1380_v12  ;;  %v353_v27 = vadd.f32 %v352_v24, %v1380_v12  ;;  %v1155_v24 = vld [vmem:[%s1794_s1 + $0x30] sm:$0xff] }
  0xaa   : > { %538 = vmatpush.bf16.msra.mxu1 %v1155_v24  ;;  %1171 = vmatpush.bf16.msra.mxu3 %v1155_v24 }
  0xab   : > { %v391_v30 = vadd.f32 %v390_v26, %v376_v25 }
  0xb0   : > { %v1382_v13 = vpop.f32.mrf.mxu0 }
  0xb1   : > { %v377_v28 = vmul.f32 %v1382_v13, %v1382_v13  ;;  %v354_v31 = vadd.f32 %v353_v27, %v1382_v13 }
  0xb3   : > { %v392_v33 = vadd.f32 %v391_v30, %v377_v28  ;;  %v1154_v30 = vld [vmem:[%s1794_s1 + $0x28] sm:$0xff] }
  0xb4   : > { %539 = vmatpush.bf16.msra.mxu1 %v1154_v30  ;;  %1172 = vmatpush.bf16.msra.mxu3 %v1154_v30 }
  0xb8   : > { %v1384_v14 = vpop.f32.mrf.mxu0 }
  0xb9   : > { %v378_v32 = vmul.f32 %v1384_v14, %v1384_v14  ;;  %v355_v34 = vadd.f32 %v354_v31, %v1384_v14 }
  0xbb   : > { %v393_v36 = vadd.f32 %v392_v33, %v378_v32 }
  0xc0   : > { %v1386_v15 = vpop.f32.mrf.mxu0 }
  0xc1   : > { %v379_v35 = vmul.f32 %v1386_v15, %v1386_v15  ;;  %v356_v37 = vadd.f32 %v355_v34, %v1386_v15 }
  0xc3   : > { %v394_v39 = vadd.f32 %v393_v36, %v379_v35  ;;  %v1153_v35 = vld [vmem:[%s1794_s1 + $0x20] sm:$0xff] }
  0xc4   : > { %540 = vmatpush.bf16.msra.mxu1 %v1153_v35  ;;  %1173 = vmatpush.bf16.msra.mxu3 %v1153_v35 }
  0xc8   : > { %v1388_v16 = vpop.f32.mrf.mxu0 }
  0xc9   : > { %v380_v38 = vmul.f32 %v1388_v16, %v1388_v16  ;;  %v357_v40 = vadd.f32 %v356_v37, %v1388_v16 }
  0xcb   : > { %v395_v43 = vadd.f32 %v394_v39, %v380_v38 }
  0xd0   : > { %v1390_v17 = vpop.f32.mrf.mxu0 }
  0xd1   : > { %v381_v41 = vmul.f32 %v1390_v17, %v1390_v17  ;;  %v358_v44 = vadd.f32 %v357_v40, %v1390_v17  ;;  %v1152_v40 = vld [vmem:[%s1794_s1 + $0x18] sm:$0xff] }
  0xd2   : > { %541 = vmatpush.bf16.msra.mxu1 %v1152_v40  ;;  %1174 = vmatpush.bf16.msra.mxu3 %v1152_v40 }
  0xd3   : > { %v396_v46 = vadd.f32 %v395_v43, %v381_v41 }
  0xd8   : > { %v1392_v18 = vpop.f32.mrf.mxu0 }
  0xd9   : > { %v382_v45 = vmul.f32 %v1392_v18, %v1392_v18  ;;  %v359_v47 = vadd.f32 %v358_v44, %v1392_v18 }
  0xdb   : > { %v397_v49 = vadd.f32 %v396_v46, %v382_v45  ;;  %v1151_v45 = vld [vmem:[%s1794_s1 + $0x10] sm:$0xff] }
  0xdc   : > { %542 = vmatpush.bf16.msra.mxu1 %v1151_v45  ;;  %1175 = vmatpush.bf16.msra.mxu3 %v1151_v45 }
  0xe0   : > { %v1394_v19 = vpop.f32.mrf.mxu0 }
  0xe1   : > { %v383_v48 = vmul.f32 %v1394_v19, %v1394_v19  ;;  %v360_v50 = vadd.f32 %v359_v47, %v1394_v19 }
  0xe3   : > { %v398_v52 = vadd.f32 %v397_v49, %v383_v48 }
  0xe8   : > { %v1396_v20 = vpop.f32.mrf.mxu0 }
  0xe9   : > { %v384_v51 = vmul.f32 %v1396_v20, %v1396_v20  ;;  %v361_v53 = vadd.f32 %v360_v50, %v1396_v20 }
  0xeb   : > { %v399_v57 = vadd.f32 %v398_v52, %v384_v51 }
  0xf0   : > { %v1398_v21 = vpop.f32.mrf.mxu0 }
  0xf1   : > { %v385_v54 = vmul.f32 %v1398_v21, %v1398_v21  ;;  %v362_v58 = vadd.f32 %v361_v53, %v1398_v21  ;;  %v222_v53 = vld [vmem:[%s1795_s2] sm:$0x1] }
  0xf3   : > { %v400_v60 = vadd.f32 %v399_v57, %v385_v54 }
  0xf8   : > { %v1411_v29 = vpop.f32.mrf.mxu0 }
  0xf9   : > { %v386_v59 = vmul.f32 %v1411_v29, %v1411_v29  ;;  %v363_v61 = vadd.f32 %v362_v58, %v1411_v29  ;;  %v223_v58 = vld [vmem:[%s1795_s2 + $0x1] sm:$0x1] }
  0xfb   : > { %v401_v0 = vadd.f32 %v400_v60, %v386_v59 }
 0x100   : > { %v1425_v42 = vpop.f32.mrf.mxu0 }
 0x101   : > { %v387_v62 = vmul.f32 %v1425_v42, %v1425_v42  ;;  %v364_v1 = vadd.f32 %v363_v61, %v1425_v42 }
 0x103   : > { %v402_v3 = vadd.f32 %v401_v0, %v387_v62 }
 0x108   : > { %v1439_v55 = vpop.f32.mrf.mxu0 }
 0x109   : > { %v388_v2 = vmul.f32 %v1439_v55, %v1439_v55  ;;  %v365_v4 = vadd.f32 %v364_v1, %v1439_v55 }
 0x10b   : > { %v403_v7 = vadd.f32 %v402_v3, %v388_v2 }
 0x110   : > { %v349_v5 = vpop.f32.mrf.mxu0 }
 0x111   : > { %v366_v8 = vadd.f32 %v365_v4, %v349_v5  ;;  %v389_v9 = vmul.f32 %v349_v5, %v349_v5 }
 0x113   : > { %v367_v22 = vrot.slane %v366_v8, 4  ;;  %v404_v23 = vadd.f32 %v403_v7, %v389_v9 }
 0x115   : > { %v368_v25 = vadd.f32 %v367_v22, %v366_v8  ;;  %v405_v26 = vrot.slane %v404_v23, 4 }
 0x117   : > { %v369_v27 = vrot.slane %v368_v25, 2  ;;  %v406_v28 = vadd.f32 %v405_v26, %v404_v23 }
 0x119   : > { %v370_v31 = vadd.f32 %v369_v27, %v368_v25  ;;  %v407_v32 = vrot.slane %v406_v28, 2 }
 0x11b   : > { %v371_v33 = vrot.slane %v370_v31, 1  ;;  %v408_v34 = vadd.f32 %v407_v32, %v406_v28 }
 0x11d   : > { %v372_v36 = vadd.f32 %v371_v33, %v370_v31  ;;  %v409_v37 = vrot.slane %v408_v34, 1 }
 0x11f   : > { %v373_v38 = vmul.f32 0.0078125, %v372_v36  ;;  %v410_v39 = vadd.f32 %v409_v37, %v408_v34 }
 0x121   : > { %v411_v41 = vmul.f32 0.0078125, %v410_v39  ;;  %v412_v43 = vmul.f32 %v373_v38, %v373_v38 }
 0x123   : > { %v413_v44 = vsub.f32 %v411_v41, %v412_v43 }
 0x125   : > { %v414_v46 = vmax.f32 %v413_v44, 0.0 }
 0x127   : > { %v415_v47 = vadd.f32 1e-05, %v414_v46 }
 0x129   : > { %1225 = vrsqrt.f32 %v415_v47  ;;  %vm422_vm2 = vweird.f32 %v415_v47 }
 0x12f   : > { %v1226_v48 = vpop.eup %1225 }
 0x130   : > { %v417_v49 = vmul.f32 %v1226_v48, %v415_v47  ;;  %vm423_vm1 = vweird.f32 %v1226_v48 }
 0x131   : > { %vm424_vm3 = vmor %vm422_vm2, %vm423_vm1 }
 0x132   : > { %v418_v50 = vmul.f32 %v1226_v48, %v417_v49 }
 0x134   : > { %v419_v51 = vmul.f32 0.5, %v418_v50 }
 0x136   : > { %v420_v52 = vsub.f32 1.5, %v419_v51 }
 0x138   : > { %v421_v54 = vmul.f32 %v1226_v48, %v420_v52 }
 0x13a   : > { %v425_v56 = vsel %vm424_vm3, %v1226_v48, %v421_v54 }
 0x13b   : > { %v426_v57 = vmul.f32 %v425_v56, %v222_v53 }
 0x13d   : > { %v427_v59 = vmul.f32 %v426_v57, %v373_v38  ;;  %v429_v60 = vperm.slane %v426_v57, 0 }
 0x13f   : > { %v428_v61 = vsub.f32 %v223_v58, %v427_v59  ;;  %v445_v62 = vmul.f32 %v429_v60, %v349_v5  ;;  %v430_v0 = vmul.f32 %v429_v60, %v1376_v10  ;;  %v431_v1 = vmul.f32 %v429_v60, %v1378_v11 }
 0x140   : > { %v442_v2 = vmul.f32 %v429_v60, %v1411_v29  ;;  %v443_v3 = vmul.f32 %v429_v60, %v1425_v42  ;;  %v444_v4 = vmul.f32 %v429_v60, %v1439_v55  ;;  %v438_v11 = vmul.f32 %v429_v60, %v1392_v18 }
 0x141   : > { %v446_v63 = vperm.slane %v428_v61, 0  ;;  %v439_v42 = vmul.f32 %v429_v60, %v1394_v19  ;;  %v440_v32 = vmul.f32 %v429_v60, %v1396_v20  ;;  %v441_v33 = vmul.f32 %v429_v60, %v1398_v21 }
 0x142   : > { %v432_v38 = vmul.f32 %v429_v60, %v1380_v12  ;;  %v433_v18 = vmul.f32 %v429_v60, %v1382_v13  ;;  %v434_v20 = vmul.f32 %v429_v60, %v1384_v14  ;;  %v435_v21 = vmul.f32 %v429_v60, %v1386_v15 }
 0x143   : > { %v462_v6 = vadd.f32 %v446_v63, %v445_v62  ;;  %v447_v7 = vadd.f32 %v446_v63, %v430_v0  ;;  %v448_v8 = vadd.f32 %v446_v63, %v431_v1  ;;  %v459_v9 = vadd.f32 %v446_v63, %v442_v2 }
 0x144   : > { %v460_v22 = vadd.f32 %v446_v63, %v443_v3  ;;  %v461_v23 = vadd.f32 %v446_v63, %v444_v4  ;;  %v455_v55 = vadd.f32 %v446_v63, %v438_v11  ;;  %v456_v31 = vadd.f32 %v446_v63, %v439_v42 }
 0x145   : > { %v463_v24 = vmax.f32 %v447_v7, 0.0  ;;  %v464_v25 = vmax.f32 %v448_v8, 0.0  ;;  %v475_v5 = vmax.f32 %v459_v9, 0.0  ;;  %v478_v26 = vmax.f32 %v462_v6, 0.0 }
 0x146   : > { %v476_v27 = vmax.f32 %v460_v22, 0.0  ;;  %v477_v10 = vmax.f32 %v461_v23, 0.0  ;;  %v471_v34 = vmax.f32 %v455_v55, 0.0  ;;  %v472_v35 = vmax.f32 %v456_v31, 0.0 }
 0x147   : > { %v479_v28 = vpack.c.bf16 %v464_v25, %v463_v24  ;;  %v457_v36 = vadd.f32 %v446_v63, %v440_v32  ;;  %v458_v37 = vadd.f32 %v446_v63, %v441_v33  ;;  %v449_v19 = vadd.f32 %v446_v63, %v432_v38 }
 0x148   : > { %v485_v29 = vpack.c.bf16 %v476_v27, %v475_v5  ;;  %v486_v30 = vpack.c.bf16 %v478_v26, %v477_v10  ;;  %v483_v39 = vpack.c.bf16 %v472_v35, %v471_v34  ;;  %v450_v43 = vadd.f32 %v446_v63, %v433_v18 }
 0x149   : > { %543 = vmatmul.bf16.vlgmr.msra.gmra.mxu1 %v479_v28  ;;  %v473_v40 = vmax.f32 %v457_v36, 0.0  ;;  %v474_v41 = vmax.f32 %v458_v37, 0.0  ;;  %v465_v45 = vmax.f32 %v449_v19, 0.0  ;;  %v451_v48 = vadd.f32 %v446_v63, %v434_v20 }
 0x14a   : > { %573 = vmatmul.bf16.vlgmr.msra.gmra.mxu3 %v485_v29  ;;  %v466_v46 = vmax.f32 %v450_v43, 0.0  ;;  %v452_v49 = vadd.f32 %v446_v63, %v435_v21  ;;  %v436_v51 = vmul.f32 %v429_v60, %v1388_v16  ;;  %v437_v52 = vmul.f32 %v429_v60, %v1390_v17 }
 0x14b   : > { %v484_v44 = vpack.c.bf16 %v474_v41, %v473_v40  ;;  %v467_v12 = vmax.f32 %v451_v48, 0.0 }
 0x14c   : > { %v480_v47 = vpack.c.bf16 %v466_v46, %v465_v45  ;;  %v468_v50 = vmax.f32 %v452_v49, 0.0  ;;  %v453_v53 = vadd.f32 %v446_v63, %v436_v51  ;;  %v454_v54 = vadd.f32 %v446_v63, %v437_v52 }
 0x14e   : > { %v481_v13 = vpack.c.bf16 %v468_v50, %v467_v12  ;;  %v469_v56 = vmax.f32 %v453_v53, 0.0  ;;  %v470_v57 = vmax.f32 %v454_v54, 0.0 }
 0x150   : > { %v482_v58 = vpack.c.bf16 %v470_v57, %v469_v56 }
 0x159   : > { %548 = vmatmul.bf16.gmra.mxu1 %v480_v47 }
 0x15a   : > { %578 = vmatmul.bf16.gmra.mxu3 %v486_v30 }
 0x169   : > { %553 = vmatmul.bf16.gmra.mxu1 %v481_v13 }
 0x179   : > { %558 = vmatmul.bf16.gmra.mxu1 %v482_v58  ;;  %v1166_v58 = vld [vmem:[%s1794_s1 + $0x88] sm:$0xff] }
 0x17a   : > { %767 = vmatpush.bf16.msra.mxu2 %v1166_v58  ;;  %1176 = vmatpush.bf16.msrb.mxu3 %v1166_v58 }
 0x189   : > { %563 = vmatmul.bf16.gmra.mxu1 %v483_v39 }
 0x199   : > { %568 = vmatmul.bf16.gmra.mxu1 %v484_v44 }
 0x1c6   : > { %v1496_v14 = vpop.f32.mrf.mxu1 }
 0x1c7   : > { %v606_v2 = vmul.f32 %v1496_v14, %v1496_v14 }
 0x1cd   : > { %v1512_v63 = vpop.f32.mrf.mxu3 }
 0x1ce   : > { %v1498_v15 = vpop.f32.mrf.mxu1  ;;  %v618_v46 = vmul.f32 %v1512_v63, %v1512_v63 }
 0x1cf   : > { %v607_v1 = vmul.f32 %v1498_v15, %v1498_v15  ;;  %v584_v3 = vadd.f32 %v1498_v15, %v1496_v14 }
 0x1d1   : > { %v622_v6 = vadd.f32 %v607_v1, %v606_v2 }
 0x1d5   : > { %v1532_v25 = vpop.f32.mrf.mxu3 }
 0x1d6   : > { %v1500_v59 = vpop.f32.mrf.mxu1  ;;  %v619_v21 = vmul.f32 %v1532_v25, %v1532_v25 }
 0x1d7   : > { %v608_v4 = vmul.f32 %v1500_v59, %v1500_v59  ;;  %v585_v7 = vadd.f32 %v584_v3, %v1500_v59 }
 0x1d9   : > { %v623_v22 = vadd.f32 %v622_v6, %v608_v4  ;;  %v1165_v6 = vld [vmem:[%s1794_s1 + $0x80] sm:$0xff] }
 0x1da   : > { %768 = vmatpush.bf16.msra.mxu2 %v1165_v6  ;;  %1177 = vmatpush.bf16.msrb.mxu3 %v1165_v6 }
 0x1dd   : > { %v1551_v37 = vpop.f32.mrf.mxu3 }
 0x1de   : > { %v1502_v61 = vpop.f32.mrf.mxu1  ;;  %v620_v50 = vmul.f32 %v1551_v37, %v1551_v37 }
 0x1df   : > { %v609_v8 = vmul.f32 %v1502_v61, %v1502_v61  ;;  %v586_v23 = vadd.f32 %v585_v7, %v1502_v61 }
 0x1e1   : > { %v624_v5 = vadd.f32 %v623_v22, %v609_v8 }
 0x1e5   : > { %v1568_v12 = vpop.f32.mrf.mxu3 }
 0x1e6   : > { %v1504_v62 = vpop.f32.mrf.mxu1  ;;  %v621_v52 = vmul.f32 %v1568_v12, %v1568_v12 }
 0x1e7   : > { %v610_v24 = vmul.f32 %v1504_v62, %v1504_v62  ;;  %v587_v26 = vadd.f32 %v586_v23, %v1504_v62 }
 0x1e9   : > { %v625_v10 = vadd.f32 %v624_v5, %v610_v24  ;;  %v1164_v24 = vld [vmem:[%s1794_s1 + $0x78] sm:$0xff] }
 0x1ea   : > { %769 = vmatpush.bf16.msra.mxu2 %v1164_v24  ;;  %1178 = vmatpush.bf16.msrb.mxu3 %v1164_v24 }
 0x1ee   : > { %v1506_v16 = vpop.f32.mrf.mxu1 }
 0x1ef   : > { %v611_v27 = vmul.f32 %v1506_v16, %v1506_v16  ;;  %v588_v28 = vadd.f32 %v587_v26, %v1506_v16 }
 0x1f1   : > { %v626_v29 = vadd.f32 %v625_v10, %v611_v27 }
 0x1f6   : > { %v1508_v17 = vpop.f32.mrf.mxu1 }
 0x1f7   : > { %v612_v11 = vmul.f32 %v1508_v17, %v1508_v17  ;;  %v589_v30 = vadd.f32 %v588_v28, %v1508_v17  ;;  %v1163_v28 = vld [vmem:[%s1794_s1 + $0x70] sm:$0xff] }
 0x1f8   : > { %770 = vmatpush.bf16.msra.mxu2 %v1163_v28  ;;  %1179 = vmatpush.bf16.msrb.mxu3 %v1163_v28 }
 0x1f9   : > { %v627_v31 = vadd.f32 %v626_v29, %v612_v11 }
 0x1fe   : > { %v1510_v60 = vpop.f32.mrf.mxu1 }
 0x1ff   : > { %v613_v42 = vmul.f32 %v1510_v60, %v1510_v60  ;;  %v590_v32 = vadd.f32 %v589_v30, %v1510_v60 }
 0x201   : > { %v628_v34 = vadd.f32 %v627_v31, %v613_v42  ;;  %v1162_v42 = vld [vmem:[%s1794_s1 + $0x68] sm:$0xff] }
 0x202   : > { %771 = vmatpush.bf16.msra.mxu2 %v1162_v42  ;;  %1180 = vmatpush.bf16.msrb.mxu3 %v1162_v42 }
 0x206   : > { %v1514_v0 = vpop.f32.mrf.mxu1 }
 0x207   : > { %v614_v33 = vmul.f32 %v1514_v0, %v1514_v0  ;;  %v591_v35 = vadd.f32 %v590_v32, %v1514_v0  ;;  %v1161_v32 = vld [vmem:[%s1794_s1 + $0x60] sm:$0xff] }
 0x208   : > { %772 = vmatpush.bf16.msra.mxu2 %v1161_v32  ;;  %1181 = vmatpush.bf16.msrb.mxu3 %v1161_v32 }
 0x209   : > { %v629_v38 = vadd.f32 %v628_v34, %v614_v33  ;;  %v1160_v34 = vld [vmem:[%s1794_s1 + $0x58] sm:$0xff] }
 0x20c   : > { %773 = vmatpush.bf16.msra.mxu2 %v1160_v34  ;;  %1182 = vmatpush.bf16.msrb.mxu3 %v1160_v34 }
 0x20e   : > { %v1527_v9 = vpop.f32.mrf.mxu1 }
 0x20f   : > { %v615_v36 = vmul.f32 %v1527_v9, %v1527_v9  ;;  %v592_v18 = vadd.f32 %v591_v35, %v1527_v9  ;;  %v1159_v35 = vld [vmem:[%s1794_s1 + $0x50] sm:$0xff] }
 0x210   : > { %774 = vmatpush.bf16.msra.mxu2 %v1159_v35  ;;  %1183 = vmatpush.bf16.msrb.mxu3 %v1159_v35 }
 0x211   : > { %v630_v40 = vadd.f32 %v629_v38, %v615_v36 }
 0x216   : > { %v1543_v55 = vpop.f32.mrf.mxu1 }
 0x217   : > { %v616_v39 = vmul.f32 %v1543_v55, %v1543_v55  ;;  %v593_v41 = vadd.f32 %v592_v18, %v1543_v55 }
 0x219   : > { %v631_v43 = vadd.f32 %v630_v40, %v616_v39 }
 0x21e   : > { %v1557_v19 = vpop.f32.mrf.mxu1 }
 0x21f   : > { %v594_v44 = vadd.f32 %v593_v41, %v1557_v19  ;;  %v617_v45 = vmul.f32 %v1557_v19, %v1557_v19  ;;  %v224_v41 = vld [vmem:[%s1795_s2 + $0x2] sm:$0x1] }
 0x221   : > { %v595_v47 = vadd.f32 %v594_v44, %v1512_v63  ;;  %v632_v20 = vadd.f32 %v631_v43, %v617_v45 }
 0x223   : > { %v596_v48 = vadd.f32 %v595_v47, %v1532_v25  ;;  %v633_v49 = vadd.f32 %v632_v20, %v618_v46  ;;  %v225_v46 = vld [vmem:[%s1795_s2 + $0x3] sm:$0x1] }
 0x225   : > { %v597_v13 = vadd.f32 %v596_v48, %v1551_v37  ;;  %v634_v51 = vadd.f32 %v633_v49, %v619_v21 }
 0x227   : > { %v598_v53 = vadd.f32 %v597_v13, %v1568_v12  ;;  %v635_v54 = vadd.f32 %v634_v51, %v620_v50 }
 0x229   : > { %v599_v56 = vrot.slane %v598_v53, 4  ;;  %v636_v57 = vadd.f32 %v635_v54, %v621_v52 }
 0x22b   : > { %v600_v1 = vadd.f32 %v599_v56, %v598_v53  ;;  %v637_v2 = vrot.slane %v636_v57, 4 }
 0x22d   : > { %v601_v3 = vrot.slane %v600_v1, 2  ;;  %v638_v4 = vadd.f32 %v637_v2, %v636_v57 }
 0x22f   : > { %v602_v7 = vadd.f32 %v601_v3, %v600_v1  ;;  %v639_v8 = vrot.slane %v638_v4, 2 }
 0x231   : > { %v603_v22 = vrot.slane %v602_v7, 1  ;;  %v640_v23 = vadd.f32 %v639_v8, %v638_v4 }
 0x233   : > { %v604_v5 = vadd.f32 %v603_v22, %v602_v7  ;;  %v641_v26 = vrot.slane %v640_v23, 1 }
 0x235   : > { %v605_v27 = vmul.f32 0.0078125, %v604_v5  ;;  %v642_v10 = vadd.f32 %v641_v26, %v640_v23 }
 0x237   : > { %v643_v11 = vmul.f32 0.0078125, %v642_v10  ;;  %v644_v29 = vmul.f32 %v605_v27, %v605_v27 }
 0x239   : > { %v645_v30 = vsub.f32 %v643_v11, %v644_v29 }
 0x23b   : > { %v646_v31 = vmax.f32 %v645_v30, 0.0 }
 0x23d   : > { %v647_v33 = vadd.f32 1e-05, %v646_v31 }
 0x23f   : > { %1227 = vrsqrt.f32 %v647_v33  ;;  %vm654_vm5 = vweird.f32 %v647_v33 }
 0x245   : > { %v1228_v36 = vpop.eup %1227 }
 0x246   : > { %v649_v38 = vmul.f32 %v1228_v36, %v647_v33  ;;  %vm655_vm4 = vweird.f32 %v1228_v36 }
 0x247   : > { %vm656_vm6 = vmor %vm654_vm5, %vm655_vm4 }
 0x248   : > { %v650_v18 = vmul.f32 %v1228_v36, %v649_v38 }
 0x24a   : > { %v651_v39 = vmul.f32 0.5, %v650_v18 }
 0x24c   : > { %v652_v40 = vsub.f32 1.5, %v651_v39 }
 0x24e   : > { %v653_v43 = vmul.f32 %v1228_v36, %v652_v40 }
 0x250   : > { %v657_v44 = vsel %vm656_vm6, %v1228_v36, %v653_v43 }
 0x251   : > { %v658_v45 = vmul.f32 %v657_v44, %v224_v41 }
 0x253   : > { %v659_v47 = vmul.f32 %v658_v45, %v605_v27  ;;  %v661_v20 = vperm.slane %v658_v45, 0 }
 0x255   : > { %v660_v21 = vsub.f32 %v225_v46, %v659_v47  ;;  %v673_v48 = vmul.f32 %v661_v20, %v1557_v19  ;;  %v662_v50 = vmul.f32 %v661_v20, %v1496_v14  ;;  %v663_v13 = vmul.f32 %v661_v20, %v1498_v15 }
 0x256   : > { %v674_v51 = vmul.f32 %v661_v20, %v1512_v63  ;;  %v675_v52 = vmul.f32 %v661_v20, %v1532_v25  ;;  %v670_v7 = vmul.f32 %v661_v20, %v1514_v0  ;;  %v671_v14 = vmul.f32 %v661_v20, %v1527_v9 }
 0x257   : > { %v678_v49 = vperm.slane %v660_v21, 0  ;;  %v672_v63 = vmul.f32 %v661_v20, %v1543_v55  ;;  %v664_v24 = vmul.f32 %v661_v20, %v1500_v59  ;;  %v665_v5 = vmul.f32 %v661_v20, %v1502_v61 }
 0x258   : > { %v676_v27 = vmul.f32 %v661_v20, %v1551_v37  ;;  %v677_v0 = vmul.f32 %v661_v20, %v1568_v12  ;;  %v666_v61 = vmul.f32 %v661_v20, %v1504_v62  ;;  %v667_v37 = vmul.f32 %v661_v20, %v1506_v16 }
 0x259   : > { %v690_v53 = vadd.f32 %v678_v49, %v673_v48  ;;  %v679_v54 = vadd.f32 %v678_v49, %v662_v50  ;;  %v680_v56 = vadd.f32 %v678_v49, %v663_v13  ;;  %v691_v57 = vadd.f32 %v678_v49, %v674_v51 }
 0x25a   : > { %v692_v58 = vadd.f32 %v678_v49, %v675_v52  ;;  %v687_v15 = vadd.f32 %v678_v49, %v670_v7  ;;  %v688_v25 = vadd.f32 %v678_v49, %v671_v14  ;;  %v689_v22 = vadd.f32 %v678_v49, %v672_v63 }
 0x25b   : > { %v695_v1 = vmax.f32 %v679_v54, 0.0  ;;  %v696_v2 = vmax.f32 %v680_v56, 0.0  ;;  %v707_v3 = vmax.f32 %v691_v57, 0.0  ;;  %v706_v23 = vmax.f32 %v690_v53, 0.0 }
 0x25c   : > { %v708_v4 = vmax.f32 %v692_v58, 0.0  ;;  %v703_v8 = vmax.f32 %v687_v15, 0.0  ;;  %v704_v26 = vmax.f32 %v688_v25, 0.0  ;;  %v705_v10 = vmax.f32 %v689_v22, 0.0 }
 0x25d   : > { %v711_v6 = vpack.c.bf16 %v696_v2, %v695_v1  ;;  %v681_v28 = vadd.f32 %v678_v49, %v664_v24  ;;  %v682_v9 = vadd.f32 %v678_v49, %v665_v5  ;;  %v693_v29 = vadd.f32 %v678_v49, %v676_v27 }
 0x25e   : > { %v717_v19 = vpack.c.bf16 %v708_v4, %v707_v3  ;;  %v715_v11 = vpack.c.bf16 %v704_v26, %v703_v8  ;;  %v694_v30 = vadd.f32 %v678_v49, %v677_v0  ;;  %v716_v55 = vpack.c.bf16 %v706_v23, %v705_v10 }
 0x25f   : > { %775 = vmatmul.bf16.vlgmr.msra.gmra.mxu2 %v711_v6  ;;  %v697_v42 = vmax.f32 %v681_v28, 0.0  ;;  %v698_v31 = vmax.f32 %v682_v9, 0.0  ;;  %v709_v32 = vmax.f32 %v693_v29, 0.0  ;;  %v683_v12 = vadd.f32 %v678_v49, %v666_v61 }
 0x260   : > { %805 = vmatmul.bf16.vlgmr.msrb.gmra.mxu3 %v717_v19  ;;  %v710_v33 = vmax.f32 %v694_v30, 0.0  ;;  %v684_v35 = vadd.f32 %v678_v49, %v667_v37  ;;  %v668_v39 = vmul.f32 %v661_v20, %v1508_v17  ;;  %v669_v40 = vmul.f32 %v661_v20, %v1510_v60 }
 0x261   : > { %v712_v34 = vpack.c.bf16 %v698_v31, %v697_v42  ;;  %v699_v36 = vmax.f32 %v683_v12, 0.0 }
 0x262   : > { %v718_v59 = vpack.c.bf16 %v710_v33, %v709_v32  ;;  %v700_v38 = vmax.f32 %v684_v35, 0.0  ;;  %v685_v41 = vadd.f32 %v678_v49, %v668_v39  ;;  %v686_v43 = vadd.f32 %v678_v49, %v669_v40 }
 0x264   : > { %v713_v18 = vpack.c.bf16 %v700_v38, %v699_v36  ;;  %v701_v44 = vmax.f32 %v685_v41, 0.0  ;;  %v702_v45 = vmax.f32 %v686_v43, 0.0 }
 0x266   : > { %v714_v46 = vpack.c.bf16 %v702_v45, %v701_v44 }
 0x26f   : > { %780 = vmatmul.bf16.gmra.mxu2 %v712_v34 }
 0x270   : > { %810 = vmatmul.bf16.gmra.mxu3 %v718_v59 }
 0x27f   : > { %785 = vmatmul.bf16.gmra.mxu2 %v713_v18 }
 0x28f   : > { %790 = vmatmul.bf16.gmra.mxu2 %v714_v46 }
 0x29f   : > { %795 = vmatmul.bf16.gmra.mxu2 %v715_v11 }
 0x2af   : > { %800 = vmatmul.bf16.gmra.mxu2 %v716_v55 }
 0x2e2   : > { %v1622_v62 = vpop.f32.mrf.mxu2 }
 0x2e3   : > { %v1638_v49 = vpop.f32.mrf.mxu3  ;;  %v838_v51 = vmul.f32 %v1622_v62, %v1622_v62 }
 0x2e4   : > { %v850_v34 = vmul.f32 %v1638_v49, %v1638_v49 }
 0x2ea   : > { %v1624_v16 = vpop.f32.mrf.mxu2 }
 0x2eb   : > { %v839_v13 = vmul.f32 %v1624_v16, %v1624_v16  ;;  %v816_v52 = vadd.f32 %v1624_v16, %v1622_v62  ;;  %v1658_v4 = vpop.f32.mrf.mxu3 }
 0x2ec   : > { %v851_v37 = vmul.f32 %v1658_v4, %v1658_v4 }
 0x2ed   : > { %v854_v54 = vadd.f32 %v839_v13, %v838_v51 }
 0x2f2   : > { %v1626_v47 = vpop.f32.mrf.mxu2 }
 0x2f3   : > { %v840_v53 = vmul.f32 %v1626_v47, %v1626_v47  ;;  %v817_v56 = vadd.f32 %v816_v52, %v1626_v47  ;;  %v1677_v28 = vpop.f32.mrf.mxu3 }
 0x2f4   : > { %v852_v38 = vmul.f32 %v1677_v28, %v1677_v28 }
 0x2f5   : > { %v855_v1 = vadd.f32 %v854_v54, %v840_v53 }
 0x2fa   : > { %v1628_v21 = vpop.f32.mrf.mxu2 }
 0x2fb   : > { %v841_v57 = vmul.f32 %v1628_v21, %v1628_v21  ;;  %v818_v2 = vadd.f32 %v817_v56, %v1628_v21  ;;  %v1694_v36 = vpop.f32.mrf.mxu3 }
 0x2fc   : > { %v853_v40 = vmul.f32 %v1694_v36, %v1694_v36 }
 0x2fd   : > { %v856_v6 = vadd.f32 %v855_v1, %v841_v57 }
 0x302   : > { %v1630_v48 = vpop.f32.mrf.mxu2 }
 0x303   : > { %v842_v3 = vmul.f32 %v1630_v48, %v1630_v48  ;;  %v819_v19 = vadd.f32 %v818_v2, %v1630_v48 }
 0x305   : > { %v857_v14 = vadd.f32 %v856_v6, %v842_v3 }
 0x30a   : > { %v1632_v17 = vpop.f32.mrf.mxu2 }
 0x30b   : > { %v843_v7 = vmul.f32 %v1632_v17, %v1632_v17  ;;  %v820_v15 = vadd.f32 %v819_v19, %v1632_v17 }
 0x30d   : > { %v858_v25 = vadd.f32 %v857_v14, %v843_v7 }
 0x312   : > { %v1634_v60 = vpop.f32.mrf.mxu2 }
 0x313   : > { %v844_v63 = vmul.f32 %v1634_v60, %v1634_v60  ;;  %v821_v8 = vadd.f32 %v820_v15, %v1634_v60 }
 0x315   : > { %v859_v24 = vadd.f32 %v858_v25, %v844_v63 }
 0x31a   : > { %v1636_v20 = vpop.f32.mrf.mxu2 }
 0x31b   : > { %v845_v22 = vmul.f32 %v1636_v20, %v1636_v20  ;;  %v822_v5 = vadd.f32 %v821_v8, %v1636_v20 }
 0x31d   : > { %v860_v27 = vadd.f32 %v859_v24, %v845_v22 }
 0x322   : > { %v1640_v50 = vpop.f32.mrf.mxu2 }
 0x323   : > { %v846_v26 = vmul.f32 %v1640_v50, %v1640_v50  ;;  %v823_v0 = vadd.f32 %v822_v5, %v1640_v50 }
 0x325   : > { %v861_v9 = vadd.f32 %v860_v27, %v846_v26 }
 0x32a   : > { %v1653_v58 = vpop.f32.mrf.mxu2 }
 0x32b   : > { %v847_v10 = vmul.f32 %v1653_v58, %v1653_v58  ;;  %v824_v11 = vadd.f32 %v823_v0, %v1653_v58 }
 0x32d   : > { %v862_v30 = vadd.f32 %v861_v9, %v847_v10 }
 0x332   : > { %v1669_v23 = vpop.f32.mrf.mxu2 }
 0x333   : > { %v848_v29 = vmul.f32 %v1669_v23, %v1669_v23  ;;  %v825_v55 = vadd.f32 %v824_v11, %v1669_v23 }
 0x335   : > { %v863_v31 = vadd.f32 %v862_v30, %v848_v29 }
 0x33a   : > { %v1683_v42 = vpop.f32.mrf.mxu2 }
 0x33b   : > { %v826_v32 = vadd.f32 %v825_v55, %v1683_v42  ;;  %v849_v33 = vmul.f32 %v1683_v42, %v1683_v42 }
 0x33d   : > { %v827_v59 = vadd.f32 %v826_v32, %v1638_v49  ;;  %v864_v61 = vadd.f32 %v863_v31, %v849_v33 }
 0x33f   : > { %v828_v12 = vadd.f32 %v827_v59, %v1658_v4  ;;  %v865_v35 = vadd.f32 %v864_v61, %v850_v34 }
 0x341   : > { %v829_v18 = vadd.f32 %v828_v12, %v1677_v28  ;;  %v866_v39 = vadd.f32 %v865_v35, %v851_v37 }
 0x343   : > { %v830_v41 = vadd.f32 %v829_v18, %v1694_v36  ;;  %v867_v43 = vadd.f32 %v866_v39, %v852_v38 }
 0x345   : > { %v831_v44 = vrot.slane %v830_v41, 4  ;;  %v868_v45 = vadd.f32 %v867_v43, %v853_v40 }
 0x347   : > { %v832_v46 = vadd.f32 %v831_v44, %v830_v41  ;;  %v869_v13 = vrot.slane %v868_v45, 4 }
 0x349   : > { %v833_v51 = vrot.slane %v832_v46, 2  ;;  %v870_v52 = vadd.f32 %v869_v13, %v868_v45 }
 0x34b   : > { %v834_v53 = vadd.f32 %v833_v51, %v832_v46  ;;  %v871_v54 = vrot.slane %v870_v52, 2 }
 0x34d   : > { %v835_v56 = vrot.slane %v834_v53, 1  ;;  %v872_v57 = vadd.f32 %v871_v54, %v870_v52 }
 0x34f   : > { %v836_v1 = vadd.f32 %v835_v56, %v834_v53  ;;  %v873_v2 = vrot.slane %v872_v57, 1 }
 0x351   : > { %v1702_v3 = vmul.f32 0.0078125, %v836_v1  ;;  %v874_v6 = vadd.f32 %v873_v2, %v872_v57 }
 0x353   : > { %v875_v19 = vmul.f32 0.0078125, %v874_v6  ;;  %v876_v7 = vmul.f32 %v1702_v3, %v1702_v3  ;;  %v879_v27 = vsub.f32 %v1622_v62, %v1702_v3  ;;  %v880_v0 = vsub.f32 %v1624_v16, %v1702_v3 }
 0x354   : > { %v881_v10 = vsub.f32 %v1626_v47, %v1702_v3  ;;  %v882_v9 = vsub.f32 %v1628_v21, %v1702_v3  ;;  %v883_v29 = vsub.f32 %v1630_v48, %v1702_v3  ;;  %v884_v62 = vsub.f32 %v1632_v17, %v1702_v3 }
 0x355   : > { %v877_v14 = vsub.f32 %v875_v19, %v876_v7  ;;  %v885_v16 = vsub.f32 %v1634_v60, %v1702_v3  ;;  %v886_v21 = vsub.f32 %v1636_v20, %v1702_v3  ;;  %v887_v17 = vsub.f32 %v1640_v50, %v1702_v3 }
 0x356   : > { %v888_v33 = vsub.f32 %v1653_v58, %v1702_v3  ;;  %v889_v59 = vsub.f32 %v1669_v23, %v1702_v3  ;;  %v890_v61 = vsub.f32 %v1683_v42, %v1702_v3  ;;  %v891_v58 = vsub.f32 %v1638_v49, %v1702_v3 }
 0x357   : > { %v878_v15 = vmax.f32 %v877_v14, 0.0  ;;  %v892_v23 = vsub.f32 %v1658_v4, %v1702_v3  ;;  %v893_v42 = vsub.f32 %v1677_v28, %v1702_v3  ;;  %v894_v35 = vsub.f32 %v1694_v36, %v1702_v3 }
 0x359   : > { %v895_v63 = vadd.f32 1e-05, %v878_v15 }
 0x35b   : > { %1229 = vrsqrt.f32 %v895_v63  ;;  %vm902_vm8 = vweird.f32 %v895_v63 }
 0x361   : > { %v1230_v25 = vpop.eup %1229 }
 0x362   : > { %v897_v8 = vmul.f32 %v1230_v25, %v895_v63  ;;  %vm903_vm7 = vweird.f32 %v1230_v25 }
 0x363   : > { %vm904_vm9 = vmor %vm902_vm8, %vm903_vm7 }
 0x364   : > { %v898_v22 = vmul.f32 %v1230_v25, %v897_v8 }
 0x366   : > { %v899_v24 = vmul.f32 0.5, %v898_v22 }
 0x368   : > { %v900_v5 = vsub.f32 1.5, %v899_v24 }
 0x36a   : > { %v901_v26 = vmul.f32 %v1230_v25, %v900_v5 }
 0x36c   : > { %v905_v11 = vsel %vm904_vm9, %v1230_v25, %v901_v26 }
 0x36d   : > { %v906_v30 = vmul.f32 %v905_v11, %v879_v27  ;;  %v907_v55 = vmul.f32 %v905_v11, %v880_v0  ;;  %v908_v31 = vmul.f32 %v905_v11, %v881_v10  ;;  %v909_v32 = vmul.f32 %v905_v11, %v882_v9 }
 0x36e   : > { %v910_v47 = vmul.f32 %v905_v11, %v883_v29  ;;  %v911_v48 = vmul.f32 %v905_v11, %v884_v62  ;;  %v912_v60 = vmul.f32 %v905_v11, %v885_v16  ;;  %v913_v34 = vmul.f32 %v905_v11, %v886_v21 }
 0x36f   : > { %922 = vst [vmem:[%s1723_s17] sm:$0xff] %v906_v30  ;;  %v914_v20 = vmul.f32 %v905_v11, %v887_v17  ;;  %v915_v50 = vmul.f32 %v905_v11, %v888_v33  ;;  %v916_v37 = vmul.f32 %v905_v11, %v889_v59  ;;  %v917_v12 = vmul.f32 %v905_v11, %v890_v61 }
 0x370   : > { %923 = vst [vmem:[%s1723_s17 + $0x8] sm:$0xff] %v907_v55  ;;  %v918_v49 = vmul.f32 %v905_v11, %v891_v58  ;;  %v919_v38 = vmul.f32 %v905_v11, %v892_v23  ;;  %v920_v4 = vmul.f32 %v905_v11, %v893_v42  ;;  %v921_v18 = vmul.f32 %v905_v11, %v894_v35 }
 0x371   : > { %924 = vst [vmem:[%s1723_s17 + $0x10] sm:$0xff] %v908_v31 }
 0x372   : > { %925 = vst [vmem:[%s1723_s17 + $0x18] sm:$0xff] %v909_v32 }
 0x373   : > { %926 = vst [vmem:[%s1723_s17 + $0x20] sm:$0xff] %v910_v47 }
 0x374   : > { %927 = vst [vmem:[%s1723_s17 + $0x28] sm:$0xff] %v911_v48 }
 0x375   : > { %928 = vst [vmem:[%s1723_s17 + $0x30] sm:$0xff] %v912_v60 }
 0x376   : > { %929 = vst [vmem:[%s1723_s17 + $0x38] sm:$0xff] %v913_v34 }
 0x377   : > { %930 = vst [vmem:[%s1723_s17 + $0x40] sm:$0xff] %v914_v20 }
 0x378   : > { %931 = vst [vmem:[%s1723_s17 + $0x48] sm:$0xff] %v915_v50 }
 0x379   : > { %932 = vst [vmem:[%s1723_s17 + $0x50] sm:$0xff] %v916_v37 }
 0x37a   : > { %933 = vst [vmem:[%s1723_s17 + $0x58] sm:$0xff] %v917_v12 }
 0x37b   : > { %934 = vst [vmem:[%s1723_s17 + $0x60] sm:$0xff] %v918_v49 }
 0x37c   : > { %935 = vst [vmem:[%s1723_s17 + $0x68] sm:$0xff] %v919_v38 }
 0x37d   : > { %936 = vst [vmem:[%s1723_s17 + $0x70] sm:$0xff] %v920_v4 }
 0x37e   : > { %937 = vst [vmem:[%s1723_s17 + $0x78] sm:$0xff] %v921_v18 }
 0x37f   : > { %1258 = shalt.err (!%p1255_p3)
}
 0x380   : > { %s1295_s8 = smov 128   ;;  %s1296_s9 = smov 8  }
 0x381   : > { %1184 = dma.vmem_to_hbm [thread:$0]  (%p1355_p5), %s952_s25, 2048, %s954_s26, %s939_s27, %s1295_s8, %s1295_s8, %s1296_s9  }
 0x382 PF: > { %p1190_p4 = scmp.ge.s32.totalorder %s1293_s15, 2  ;;  %s968_s10 = sand.u32 1, %s1281_s12  }
 0x383   : > { %s969_s11 = scalar_lea.sflag [#allocation3], %s968_s10 }
 0x384   : > { %p1187_p7 = pnand %p1190_p4, %p1359_p6 }
 0x386   : > { %p1188_p8 = pneg %p1187_p7 }
 0x388   : > { %1276 = dma.done.wait (%p1188_p8), %s969_s11, 2048  }
 0x389   : > { %1278 = vsyncadd (%p1188_p8), %s969_s11, 4294965248  ;;  %p13_p9 = scmp.ge.s32.totalorder %s1342_s18, 4   ;;  %s1799_s12 = smov %s1285_s13 }
 0x38a   : > { %s1800_s13 = smov %s1289_s14  ;;  %s1801_s14 = smov %s1353_s21 }
 0x38b   : > { %s1802_s15 = smov %s1342_s18  ;;  %15 = sbr.rel (!%p13_p9) target bundleno = 3 (0x3), region = 67 }
 0x390   :  { %975 = vsyncpa [#allocation3], 1 }
 0x391   :  { %977 = vsyncpa [#allocation3 + $0x1], 1 }

</bundles_post_ra>
